<compile_context>
chip_gen: v7x
topology: tpu7x:2x2x1
jax: 0.10.0
libtpu: 0.0.40
codegen_flags: <defaults>
</compile_context>

<pallas_src>
from functools import partial

import jax
import jax.numpy as jnp
from jax.experimental import pallas as pl
from jax.experimental.pallas import tpu as pltpu

_LANE = 128
_TB_CAP = 2048


def _round_up(x, m):
    return (x + m - 1) // m * m


def _choose_row_tile(B):
    """Row tile: as fat as reasonable (fewer grid steps), but keep >=2 blocks on the
    'parallel' axis once B is large so a 2-TC chip (v7x) can shard the batch."""
    min_blocks = 2 if B > 1024 else 1
    n_blocks = max(min_blocks, pl.cdiv(B, _TB_CAP))
    return max(8, _round_up(pl.cdiv(B, n_blocks), 8))


def _similarity_kernel(lvec_ref, rvec_ref, whm_ref, wha_ref, bh_ref, wp_ref,
                       bp_ref, out_ref):
    l = lvec_ref[...]                                      # (TB, M) f32
    r = rvec_ref[...]                                      # (TB, M) f32

    # Elementwise features in f32 on the VPU, cast to bf16 just before the MXU.
    mult = (l * r).astype(jnp.bfloat16)
    absd = jnp.abs(l - r).astype(jnp.bfloat16)

    # Hidden layer: two (TB,M)x(M,128) MXU passes, f32 accumulate; H padded to 128 lanes
    # (padded columns give sigmoid(0)=0.5 but hit zero Wp rows, so they contribute nothing).
    pre = (jnp.dot(mult, whm_ref[...], preferred_element_type=jnp.float32)
           + jnp.dot(absd, wha_ref[...], preferred_element_type=jnp.float32)
           + bh_ref[...])
    h = jax.nn.sigmoid(pre)                                # (TB, 128) f32

    # Output layer: (TB,128)x(128,128) MXU pass; padded classes carry a -1e30 bias so
    # they vanish from the softmax normalization.
    logits = (jnp.dot(h.astype(jnp.bfloat16), wp_ref[...],
                      preferred_element_type=jnp.float32)
              + bp_ref[...])                               # (TB, 128) f32

    # log_softmax in f32 (PyTorch dim=1 for 2-D input), emitted as bf16 (lane-dense vst).
    mx = jnp.max(logits, axis=-1, keepdims=True)
    shifted = logits - mx
    lse = jnp.log(jnp.sum(jnp.exp(shifted), axis=-1, keepdims=True))
    out_ref[...] = (shifted - lse).astype(out_ref.dtype)


def prepare_similarity_params(wh_w, wh_b, wp_w, wp_b):
    """One-time (model-setup) weight prep: split/transpose Wh, bf16-cast, lane-pad H and C."""
    hidden_dim, two_m = wh_w.shape
    mem_dim = two_m // 2
    num_classes = wp_w.shape[0]
    h_pad = _round_up(hidden_dim, _LANE)
    c_pad = _round_up(num_classes, _LANE)

    wh_t = jnp.asarray(wh_w, jnp.float32).T                               # (2M, H)
    whm = jnp.zeros((mem_dim, h_pad), jnp.float32)
    whm = whm.at[:, :hidden_dim].set(wh_t[:mem_dim]).astype(jnp.bfloat16)  # (M, 128)
    wha = jnp.zeros((mem_dim, h_pad), jnp.float32)
    wha = wha.at[:, :hidden_dim].set(wh_t[mem_dim:]).astype(jnp.bfloat16)  # (M, 128)
    bh = jnp.zeros((1, h_pad), jnp.float32)
    bh = bh.at[0, :hidden_dim].set(jnp.asarray(wh_b, jnp.float32))         # (1, 128)

    wp_t = jnp.zeros((h_pad, c_pad), jnp.float32)
    wp_t = wp_t.at[:hidden_dim, :num_classes].set(
        jnp.asarray(wp_w, jnp.float32).T).astype(jnp.bfloat16)             # (128, 128)
    bp = jnp.full((1, c_pad), -1e30, jnp.float32)
    bp = bp.at[0, :num_classes].set(jnp.asarray(wp_b, jnp.float32))        # (1, 128)

    return {"whm": whm, "wha": wha, "bh": bh, "wp_t": wp_t, "bp": bp,
            "num_classes": num_classes}


@partial(jax.jit, static_argnames=("num_classes",))
def _similarity_forward_impl(lvec, rvec, whm, wha, bh, wp_t, bp, *, num_classes):
    B, M = lvec.shape
    H_pad = whm.shape[1]
    C_pad = wp_t.shape[1]

    TB = _choose_row_tile(B)
    grid = (pl.cdiv(B, TB),)

    # Advisory scheduling hint; the kernel is overhead/HBM-bound, not MXU-bound.
    cost = pl.CostEstimate(
        flops=2 * B * (2 * M * H_pad + H_pad * C_pad),
        transcendentals=B * (H_pad + C_pad),
        bytes_accessed=(2 * B * M * 4                                   # lvec, rvec (f32)
                        + (2 * M * H_pad + H_pad * C_pad) * 2           # bf16 weights
                        + (H_pad + C_pad) * 4                           # f32 biases
                        + B * C_pad * 2))                               # bf16 output

    out = pl.pallas_call(
        _similarity_kernel,
        out_shape=jax.ShapeDtypeStruct((B, C_pad), jnp.bfloat16),
        grid_spec=pltpu.PrefetchScalarGridSpec(
            num_scalar_prefetch=0,
            grid=grid,
            in_specs=[
                pl.BlockSpec((TB, M), lambda i: (i, 0)),          # lvec rows
                pl.BlockSpec((TB, M), lambda i: (i, 0)),          # rvec rows
                pl.BlockSpec((M, H_pad), lambda i: (0, 0)),       # Wh^T (mult half), resident
                pl.BlockSpec((M, H_pad), lambda i: (0, 0)),       # Wh^T (abs half), resident
                pl.BlockSpec((1, H_pad), lambda i: (0, 0)),       # bh (H-padded), resident
                pl.BlockSpec((H_pad, C_pad), lambda i: (0, 0)),   # Wp^T (padded), resident
                pl.BlockSpec((1, C_pad), lambda i: (0, 0)),       # bp (padded), resident
            ],
            out_specs=pl.BlockSpec((TB, C_pad), lambda i: (i, 0)),
        ),
        compiler_params=pltpu.CompilerParams(
            dimension_semantics=("parallel",),
        ),
        cost_estimate=cost,
    )(lvec, rvec, whm, wha, bh, wp_t, bp)

    # Slice the real classes (padded columns hold ~-1e30) and return f32 like the module.
    return out[:, :num_classes].astype(jnp.float32)


def similarity_forward(lvec, rvec, params):
    """lvec, rvec: (B, mem_dim) f32; params from prepare_similarity_params()."""
    return _similarity_forward_impl(
        lvec, rvec, params["whm"], params["wha"], params["bh"],
        params["wp_t"], params["bp"], num_classes=params["num_classes"])


def _reference(lvec, rvec, wh_w, wh_b, wp_w, wp_b):
    mult = lvec * rvec
    absd = jnp.abs(lvec - rvec)
    vec = jnp.concatenate([mult, absd], axis=1)
    h = jax.nn.sigmoid(vec @ wh_w.T + wh_b)
    logits = h @ wp_w.T + wp_b
    return jax.nn.log_softmax(logits, axis=-1)


if __name__ == "__main__":
    mem_dim = 32
    hidden_dim = 16
    num_classes = 5

    key = jax.random.PRNGKey(0)
    k1, k2, k3, k4, k5, k6, k7, k8 = jax.random.split(key, 8)

    # Linear shapes: weight (out, in), bias (out,), as in the PyTorch module.
    wh_w = 0.1 * jax.random.normal(k3, (hidden_dim, 2 * mem_dim), dtype=jnp.float32)
    wh_b = 0.1 * jax.random.normal(k4, (hidden_dim,), dtype=jnp.float32)
    wp_w = 0.1 * jax.random.normal(k5, (num_classes, hidden_dim), dtype=jnp.float32)
    wp_b = 0.1 * jax.random.normal(k6, (num_classes,), dtype=jnp.float32)

    # Weight prep hoisted out of the per-call path (done once at "model setup").
    params = prepare_similarity_params(wh_w, wh_b, wp_w, wp_b)

    # Two batches: 8 pairs (aligned) and 3 pairs (exercises the ragged last block).
    for batch, kl, kr in ((8, k1, k2), (3, k7, k8)):
        lvec = jax.random.normal(kl, (batch, mem_dim), dtype=jnp.float32)
        rvec = jax.random.normal(kr, (batch, mem_dim), dtype=jnp.float32)

        out = similarity_forward(lvec, rvec, params)
        jax.block_until_ready(out)

        ref = _reference(lvec, rvec, wh_w, wh_b, wp_w, wp_b)
        assert out.shape == (batch, num_classes)
        # bf16 MXU operands + bf16 output writeback -> loosened tolerance vs f32 reference.
        assert jnp.allclose(out, ref, atol=3e-2, rtol=3e-2), \
            f"mismatch vs reference at batch={batch}"

    print("KERNEL_OK")
</pallas_src>

<mosaic_0001>
module attributes {stable_mosaic.version = 11 : i64} {
  func.func @_similarity_kernel(%arg0: i32, %arg1: memref<8x32xf32, #tpu.memory_space<vmem>>, %arg2: memref<8x32xf32, #tpu.memory_space<vmem>>, %arg3: memref<32x128xbf16, #tpu.memory_space<vmem>>, %arg4: memref<32x128xbf16, #tpu.memory_space<vmem>>, %arg5: memref<1x128xf32, #tpu.memory_space<vmem>>, %arg6: memref<128x128xbf16, #tpu.memory_space<vmem>>, %arg7: memref<1x128xf32, #tpu.memory_space<vmem>>, %arg8: memref<8x128xbf16, #tpu.memory_space<vmem>>) attributes {dimension_semantics = [#tpu.dimension_semantics<parallel>], iteration_bounds = array<i64: 1>, scalar_prefetch = 0 : i64, scratch_operands = 0 : i64, tpu.core_type = #tpu.core_type<tc>, window_params = [{transform_indices = @transform_0, window_bounds = array<i64: 8, 32>}, {transform_indices = @transform_1, window_bounds = array<i64: 8, 32>}, {pipeline_mode = #tpu.pipeline_mode<synchronous>, transform_indices = @transform_2, window_bounds = array<i64: 32, 128>}, {pipeline_mode = #tpu.pipeline_mode<synchronous>, transform_indices = @transform_3, window_bounds = array<i64: 32, 128>}, {pipeline_mode = #tpu.pipeline_mode<synchronous>, transform_indices = @transform_4, window_bounds = array<i64: 1, 128>}, {pipeline_mode = #tpu.pipeline_mode<synchronous>, transform_indices = @transform_5, window_bounds = array<i64: 128, 128>}, {pipeline_mode = #tpu.pipeline_mode<synchronous>, transform_indices = @transform_6, window_bounds = array<i64: 1, 128>}, {transform_indices = @transform_7, window_bounds = array<i64: 8, 128>}]} {
    %c0 = arith.constant 0 : index
    %c0_0 = arith.constant 0 : index
    %0 = vector.load %arg1[%c0, %c0_0] : memref<8x32xf32, #tpu.memory_space<vmem>>, vector<8x32xf32>
    %c0_1 = arith.constant 0 : index
    %c0_2 = arith.constant 0 : index
    %1 = vector.load %arg2[%c0_1, %c0_2] : memref<8x32xf32, #tpu.memory_space<vmem>>, vector<8x32xf32>
    %2 = arith.mulf %0, %1 : vector<8x32xf32>
    %3 = arith.truncf %2 : vector<8x32xf32> to vector<8x32xbf16>
    %4 = arith.subf %0, %1 : vector<8x32xf32>
    %5 = math.absf %4 : vector<8x32xf32>
    %6 = arith.truncf %5 : vector<8x32xf32> to vector<8x32xbf16>
    %c0_3 = arith.constant 0 : index
    %c0_4 = arith.constant 0 : index
    %7 = vector.load %arg3[%c0_3, %c0_4] : memref<32x128xbf16, #tpu.memory_space<vmem>>, vector<32x128xbf16>
    %cst = arith.constant dense<0.000000e+00> : vector<8x128xf32>
    %8 = tpu.matmul %3, %7, %cst {dimension_numbers = #tpu.dot_dimension_numbers<[1], [0], [0], [1], [0, 0, 1, 1], [], []>} : vector<8x32xbf16>, vector<32x128xbf16>, vector<8x128xf32> -> vector<8x128xf32>
    %c0_5 = arith.constant 0 : index
    %c0_6 = arith.constant 0 : index
    %9 = vector.load %arg4[%c0_5, %c0_6] : memref<32x128xbf16, #tpu.memory_space<vmem>>, vector<32x128xbf16>
    %cst_7 = arith.constant dense<0.000000e+00> : vector<8x128xf32>
    %10 = tpu.matmul %6, %9, %cst_7 {dimension_numbers = #tpu.dot_dimension_numbers<[1], [0], [0], [1], [0, 0, 1, 1], [], []>} : vector<8x32xbf16>, vector<32x128xbf16>, vector<8x128xf32> -> vector<8x128xf32>
    %11 = arith.addf %8, %10 : vector<8x128xf32>
    %c0_8 = arith.constant 0 : index
    %c0_9 = arith.constant 0 : index
    %12 = vector.load %arg5[%c0_8, %c0_9] : memref<1x128xf32, #tpu.memory_space<vmem>>, vector<1x128xf32>
    %13 = vector.broadcast %12 : vector<1x128xf32> to vector<8x128xf32>
    %14 = arith.addf %11, %13 : vector<8x128xf32>
    %15 = arith.negf %14 : vector<8x128xf32>
    %16 = math.exp %15 : vector<8x128xf32>
    %cst_10 = arith.constant 1.000000e+00 : f32
    %17 = vector.broadcast %cst_10 : f32 to vector<8x128xf32>
    %18 = arith.addf %17, %16 : vector<8x128xf32>
    %19 = arith.divf %17, %18 : vector<8x128xf32>
    %20 = arith.truncf %19 : vector<8x128xf32> to vector<8x128xbf16>
    %c0_11 = arith.constant 0 : index
    %c0_12 = arith.constant 0 : index
    %21 = vector.load %arg6[%c0_11, %c0_12] : memref<128x128xbf16, #tpu.memory_space<vmem>>, vector<128x128xbf16>
    %cst_13 = arith.constant dense<0.000000e+00> : vector<8x128xf32>
    %22 = tpu.matmul %20, %21, %cst_13 {dimension_numbers = #tpu.dot_dimension_numbers<[1], [0], [0], [1], [0, 0, 1, 1], [], []>} : vector<8x128xbf16>, vector<128x128xbf16>, vector<8x128xf32> -> vector<8x128xf32>
    %c0_14 = arith.constant 0 : index
    %c0_15 = arith.constant 0 : index
    %23 = vector.load %arg7[%c0_14, %c0_15] : memref<1x128xf32, #tpu.memory_space<vmem>>, vector<1x128xf32>
    %24 = vector.broadcast %23 : vector<1x128xf32> to vector<8x128xf32>
    %25 = arith.addf %22, %24 : vector<8x128xf32>
    %cst_16 = arith.constant dense<0xFF800000> : vector<8xf32>
    %26 = vector.multi_reduction <maximumf>, %25, %cst_16 [1] : vector<8x128xf32> to vector<8xf32>
    %27 = vector.shape_cast %26 : vector<8xf32> to vector<8x1xf32>
    %28 = vector.broadcast %27 : vector<8x1xf32> to vector<8x128xf32>
    %29 = arith.subf %25, %28 : vector<8x128xf32>
    %30 = math.exp %29 : vector<8x128xf32>
    %cst_17 = arith.constant dense<0.000000e+00> : vector<8xf32>
    %31 = vector.multi_reduction <add>, %30, %cst_17 [1] : vector<8x128xf32> to vector<8xf32>
    %32 = vector.shape_cast %31 : vector<8xf32> to vector<8x1xf32>
    %33 = math.log %32 : vector<8x1xf32>
    %34 = vector.broadcast %33 : vector<8x1xf32> to vector<8x128xf32>
    %35 = arith.subf %29, %34 : vector<8x128xf32>
    %36 = arith.truncf %35 : vector<8x128xf32> to vector<8x128xbf16>
    %c0_18 = arith.constant 0 : index
    %c0_19 = arith.constant 0 : index
    %37 = vector.load %arg8[%c0_18, %c0_19] : memref<8x128xbf16, #tpu.memory_space<vmem>>, vector<8x128xbf16>
    tpu.vector_store %arg8[%c0_18, %c0_19], %36 {strides = array<i32>} : memref<8x128xbf16, #tpu.memory_space<vmem>>, vector<8x128xbf16>,
    return
  }
  func.func @transform_0(%arg0: i32) -> (i32, i32) {
    %c0_i32 = arith.constant 0 : i32
    %c0_i32_0 = arith.constant 0 : i32
    return %arg0, %c0_i32 : i32, i32
  }
  func.func @transform_1(%arg0: i32) -> (i32, i32) {
    %c0_i32 = arith.constant 0 : i32
    %c0_i32_0 = arith.constant 0 : i32
    return %arg0, %c0_i32 : i32, i32
  }
  func.func @transform_2(%arg0: i32) -> (i32, i32) {
    %c0_i32 = arith.constant 0 : i32
    %c0_i32_0 = arith.constant 0 : i32
    %c0_i32_1 = arith.constant 0 : i32
    return %c0_i32, %c0_i32_0 : i32, i32
  }
  func.func @transform_3(%arg0: i32) -> (i32, i32) {
    %c0_i32 = arith.constant 0 : i32
    %c0_i32_0 = arith.constant 0 : i32
    %c0_i32_1 = arith.constant 0 : i32
    return %c0_i32, %c0_i32_0 : i32, i32
  }
  func.func @transform_4(%arg0: i32) -> (i32, i32) {
    %c0_i32 = arith.constant 0 : i32
    %c0_i32_0 = arith.constant 0 : i32
    %c0_i32_1 = arith.constant 0 : i32
    return %c0_i32, %c0_i32_0 : i32, i32
  }
  func.func @transform_5(%arg0: i32) -> (i32, i32) {
    %c0_i32 = arith.constant 0 : i32
    %c0_i32_0 = arith.constant 0 : i32
    %c0_i32_1 = arith.constant 0 : i32
    return %c0_i32, %c0_i32_0 : i32, i32
  }
  func.func @transform_6(%arg0: i32) -> (i32, i32) {
    %c0_i32 = arith.constant 0 : i32
    %c0_i32_0 = arith.constant 0 : i32
    %c0_i32_1 = arith.constant 0 : i32
    return %c0_i32, %c0_i32_0 : i32, i32
  }
  func.func @transform_7(%arg0: i32) -> (i32, i32) {
    %c0_i32 = arith.constant 0 : i32
    %c0_i32_0 = arith.constant 0 : i32
    return %arg0, %c0_i32 : i32, i32
  }
}

</mosaic_0001>

<bundles_post_ra>
// kernel: _similarity_forward_impl.1
= control target key start
LH: loop header
LB: loop body
LE: loop exit
PB: predicated region body
PF: predicated region fallthrough
CT: control target
= control target key end

     0   :  { %12 = vsyncpa [#allocation3], 0  ;;  %s705_s0 = inlined_call_operand.hbm [shape: f32[8,32], index: 0, kind: input, shape index: {}]   ;;  %s706_s1 = inlined_call_operand.hbm [shape: f32[8,32], index: 1, kind: input, shape index: {}]   ;;  %s707_s2 = inlined_call_operand.hbm [shape: bf16[32,128], index: 2, kind: input, shape index: {}]   ;;  %s708_s3 = inlined_call_operand.hbm [shape: bf16[32,128], index: 3, kind: input, shape index: {}]   ;;  %s709_s4 = inlined_call_operand.vmem [shape: f32[1,128], index: 4, kind: input, shape index: {}]   ;;  %s710_s5 = inlined_call_operand.hbm [shape: bf16[128,128], index: 5, kind: input, shape index: {}]   ;;  %s711_s6 = inlined_call_operand.vmem [shape: f32[1,128], index: 6, kind: input, shape index: {}]   ;;  %s712_s7 = inlined_call_operand.vmem [shape: bf16[8,128], index: 7, kind: output, shape index: {}]  }
   0x1   :  { %13 = vsyncpa [#allocation5], 0 }
   0x2   :  { %14 = vsyncpa [#allocation8], 0  ;;  %s575_s24 = smov [#allocation4]   ;;  %s459_s28 = scalar_lea.hbm %s706_s1, 128 }
   0x3   :  { %s31_s25 = sshll.u32 %s575_s24, 4  ;;  %p460_p0 = scmp.ne.s32.totalorder %s706_s1, %s459_s28  ;;  %s32_s25 = int_to_ptr.vmem [resolvable:$true] %s31_s25 }
   0x4   :  { %p463_p1 = scmp.lt.u32.totalorder %s459_s28, %s706_s1 }
   0x6   :  { %p465_p2 = pnand %p463_p1, %p460_p0 }
   0x8   :  { %468 = shalt.err (!%p465_p2)
}
   0x9   :  { %s469_s10 = scalar_lea.vmem %s32_s25, 128  ;;  %p474_p4 = scmp.lt.s32.totalorder %s32_s25, %s32_s25 }
   0xa   :  { %p470_p3 = scmp.ne.s32.totalorder %s32_s25, %s469_s10  ;;  %p475_p5 = scmp.lt.s32.totalorder %s469_s10, %s469_s10 }
   0xc   :  { %p476_p6 = por %p475_p5, %p474_p4 }
   0xe   :  { %p477_p7 = pnand %p476_p6, %p470_p3 }
  0x10   :  { %480 = shalt.err (!%p477_p7)
}
  0x11   :  { %34 = dma.hbm_to_vmem [thread:$0]  %s706_s1, 128, %s32_s25, [#allocation5]  }
  0x12   :  { %s576_s13 = smov [#allocation7]   ;;  %s577_s15 = smov [#allocation2]  }
  0x13   :  { %s52_s14 = sshll.u32 %s576_s13, 4  ;;  %s21_s16 = sshll.u32 %s577_s15, 4  ;;  %s53_s14 = int_to_ptr.vmem [resolvable:$true] %s52_s14  ;;  %s22_s16 = int_to_ptr.vmem [resolvable:$true] %s21_s16 }
  0x14   :  { %s481_s19 = scalar_lea.hbm %s708_s3, 256 }
  0x15   :  { %p482_p8 = scmp.ne.s32.totalorder %s708_s3, %s481_s19  ;;  %p485_p9 = scmp.lt.u32.totalorder %s481_s19, %s708_s3 }
  0x17   :  { %p487_p10 = pnand %p485_p9, %p482_p8 }
  0x19   :  { %490 = shalt.err (!%p487_p10)
}
  0x1a   :  { %s491_s1 = scalar_lea.vmem %s53_s14, 256  ;;  %p496_p12 = scmp.lt.s32.totalorder %s53_s14, %s53_s14 }
  0x1b   :  { %p492_p11 = scmp.ne.s32.totalorder %s53_s14, %s491_s1  ;;  %p497_p13 = scmp.lt.s32.totalorder %s491_s1, %s491_s1 }
  0x1d   :  { %p498_p0 = por %p497_p13, %p496_p12 }
  0x1f   :  { %p499_p1 = pnand %p498_p0, %p492_p11 }
  0x21   :  { %502 = shalt.err (!%p499_p1)
}
  0x22   :  { %s578_s24 = smov 64   ;;  %s579_s25 = smov 4  }
  0x23   :  { %58 = dma.hbm_to_vmem [thread:$0]  %s708_s3, 256, %s53_s14, [#allocation8], %s578_s24, %s578_s24, %s579_s25  }
  0x24   :  { %s503_s30 = scalar_lea.hbm %s705_s0, 128 }
  0x25   :  { %p504_p2 = scmp.ne.s32.totalorder %s705_s0, %s503_s30  ;;  %p507_p3 = scmp.lt.u32.totalorder %s503_s30, %s705_s0 }
  0x27   :  { %p509_p4 = pnand %p507_p3, %p504_p2 }
  0x29   :  { %512 = shalt.err (!%p509_p4)
}
  0x2a   :  { %s513_s12 = scalar_lea.vmem %s22_s16, 128  ;;  %p518_p6 = scmp.lt.s32.totalorder %s22_s16, %s22_s16 }
  0x2b   :  { %p514_p5 = scmp.ne.s32.totalorder %s22_s16, %s513_s12  ;;  %p519_p7 = scmp.lt.s32.totalorder %s513_s12, %s513_s12 }
  0x2d   :  { %p520_p8 = por %p519_p7, %p518_p6 }
  0x2f   :  { %p521_p9 = pnand %p520_p8, %p514_p5 }
  0x31   :  { %524 = shalt.err (!%p521_p9)
}
  0x32   :  { %24 = dma.hbm_to_vmem [thread:$0]  %s705_s0, 128, %s22_s16, [#allocation3]  }
  0x33   :  { %s580_s14 = smov [#allocation6]   ;;  %s581_s17 = smov [#allocation9]  }
  0x34   :  { %s40_s15 = sshll.u32 %s580_s14, 4  ;;  %s66_s18 = sshll.u32 %s581_s17, 4  ;;  %s41_s15 = int_to_ptr.vmem [resolvable:$true] %s40_s15  ;;  %s67_s18 = int_to_ptr.vmem [resolvable:$true] %s66_s18 }
  0x35   :  { %s525_s21 = scalar_lea.hbm %s707_s2, 256 }
  0x36   :  { %p526_p10 = scmp.ne.s32.totalorder %s707_s2, %s525_s21  ;;  %p529_p11 = scmp.lt.u32.totalorder %s525_s21, %s707_s2 }
  0x38   :  { %p531_p12 = pnand %p529_p11, %p526_p10 }
  0x3a   :  { %534 = shalt.err (!%p531_p12)
}
  0x3b   :  { %s535_s0 = scalar_lea.vmem %s41_s15, 256  ;;  %p540_p0 = scmp.lt.s32.totalorder %s41_s15, %s41_s15 }
  0x3c   :  { %p536_p13 = scmp.ne.s32.totalorder %s41_s15, %s535_s0  ;;  %p541_p1 = scmp.lt.s32.totalorder %s535_s0, %s535_s0 }
  0x3e   :  { %p542_p2 = por %p541_p1, %p540_p0 }
  0x40   :  { %p543_p3 = pnand %p542_p2, %p536_p13 }
  0x42   :  { %546 = shalt.err (!%p543_p3)
}
  0x43   :  { %46 = dma.hbm_to_vmem [thread:$0]  %s707_s2, 256, %s41_s15, [#allocation5], %s578_s24, %s578_s24, %s579_s25  }
  0x44   :  { %s547_s30 = scalar_lea.hbm %s710_s5, 1024 }
  0x45   :  { %p548_p4 = scmp.ne.s32.totalorder %s710_s5, %s547_s30  ;;  %p551_p5 = scmp.lt.u32.totalorder %s547_s30, %s710_s5 }
  0x47   :  { %p553_p6 = pnand %p551_p5, %p548_p4 }
  0x49   :  { %556 = shalt.err (!%p553_p6)
}
  0x4a   :  { %s557_s12 = scalar_lea.vmem %s67_s18, 1024  ;;  %p562_p8 = scmp.lt.s32.totalorder %s67_s18, %s67_s18 }
  0x4b   :  { %p558_p7 = scmp.ne.s32.totalorder %s67_s18, %s557_s12  ;;  %p563_p9 = scmp.lt.s32.totalorder %s557_s12, %s557_s12 }
  0x4d   :  { %p564_p10 = por %p563_p9, %p562_p8 }
  0x4f   :  { %p565_p11 = pnand %p564_p10, %p558_p7 }
  0x51   :  { %568 = shalt.err (!%p565_p11)
}
  0x52   :  { %72 = dma.hbm_to_vmem [thread:$0]  %s710_s5, 1024, %s67_s18, [#allocation8], %s578_s24, %s578_s24, %s579_s25  }
  0x53   :  { %569 = dma.done.wait [#allocation3], 128  }
  0x54   :  { %570 = vsyncadd [#allocation3], 4294967168 }
  0x55   :  { %571 = dma.done.wait [#allocation5], 384  }
  0x56   :  { %572 = vsyncadd [#allocation5], 4294966912 }
  0x57   :  { %573 = dma.done.wait [#allocation8], 1280  }
  0x58   :  { %574 = vsyncadd [#allocation8], 4294966016  ;;  %v582_v0 = vmov 0.0   ;;  %vm583_vm0 = vmmov 0   ;;  %v439_v1 = vld [vmem:[#allocation7] sm:$0xff]   ;;  %v440_v2 = vld [vmem:[#allocation7 + $0x8] sm:$0xff]  }
  0x59   :  { %394 = vmatprep.subr.bf16.mxu1 %v582_v0  ;;  %398 = vmatprep.mubr.msk.bf16.mxu1 %vm583_vm0, %v582_v0  ;;  %v91_v3 = vld [vmem:[#allocation2] sm:$0xff]  ;;  %v92_v4 = vld [vmem:[#allocation4] sm:$0xff]  ;;  %vm118_vm1 = vcmask 261120   ;;  %v441_v6 = vld [vmem:[#allocation6] sm:$0xff]  }
  0x5a   :  { %410 = vmatprep.subr.bf16.mxu0 %v582_v0  ;;  %426 = vmatprep.mubr.msk.bf16.mxu0 %vm583_vm0, %v582_v0  ;;  %v95_v5 = vsub.f32 %v91_v3, %v92_v4  ;;  %v93_v9 = vmul.f32 %v92_v4, %v91_v3  ;;  %v442_v10 = vld [vmem:[#allocation6 + $0x8] sm:$0xff]   ;;  %v443_v12 = vld [vmem:[#allocation9] sm:$0xff]   ;;  %v445_v14 = vld [vmem:[#allocation9 + $0x10] sm:$0xff]  }
  0x5b   :  { %395 = vmatpush3.bf16.msra.mxu1 %v439_v1  ;;  %411 = vmatpush3.bf16.msra.mxu0 %v443_v12  ;;  %v444_v13 = vld [vmem:[#allocation9 + $0x8] sm:$0xff]   ;;  %v446_v15 = vld [vmem:[#allocation9 + $0x18] sm:$0xff]   ;;  %v447_v16 = vld [vmem:[#allocation9 + $0x20] sm:$0xff]  }
  0x5c   :  { %396 = vmatprep.subr.bf16.mxu1 %v582_v0  ;;  %v96_v7 = vand.u32 2147483647, %v95_v5  ;;  %v94_v11 = vpack.c.bf16 %v93_v9, %v93_v9  ;;  %412 = vmatprep.subr.bf16.mxu0 %v582_v0  ;;  %v448_v17 = vld [vmem:[#allocation9 + $0x28] sm:$0xff]   ;;  %v449_v18 = vld [vmem:[#allocation9 + $0x30] sm:$0xff]   ;;  %v450_v19 = vld [vmem:[#allocation9 + $0x38] sm:$0xff]  }
  0x5d   :  { %v368_v25 = vld [vmem:[%s709_s4] ss:$0 sm:$0xff] }
  0x5e   :  { %v97_v8 = vpack.c.bf16 %v96_v7, %v96_v7  ;;  %v370_v36 = vld [vmem:[%s711_s6] ss:$0 sm:$0xff] }
  0x5f   :  { %397 = vmatpush3.bf16.msra.mxu1 %v440_v2  ;;  %413 = vmatpush3.bf16.msra.mxu0 %v444_v13 }
  0x60   :  { %402 = vmatprep.subr.bf16.mxu1 %v582_v0  ;;  %414 = vmatprep.subr.bf16.mxu0 %v582_v0 }
  0x62   :  { %399 = vmatmul.mubr.msk.bf16.vlgmr.msra.gmra.mrb[0].mxu1 %vm118_vm1, %v97_v8 }
  0x63   :  { %403 = vmatpush3.bf16.msra.mxu1 %v441_v6  ;;  %406 = vmatprep.mubr.msk.bf16.mxu1 %vm583_vm0, %v582_v0 }
  0x64   :  { %404 = vmatprep.subr.bf16.mxu1 %v582_v0  ;;  %415 = vmatpush3.bf16.msra.mxu0 %v445_v14 }
  0x65   :  { %416 = vmatprep.subr.bf16.mxu0 %v582_v0 }
  0x67   :  { %405 = vmatpush3.bf16.msra.mxu1 %v442_v10 }
  0x68   :  { %417 = vmatpush3.bf16.msra.mxu0 %v446_v15 }
  0x69   :  { %418 = vmatprep.subr.bf16.mxu0 %v582_v0 }
  0x6a   :  { %407 = vmatmul.mubr.msk.bf16.vlgmr.msra.gmra.mrb[4].mxu1 %vm118_vm1, %v94_v11 }
  0x6c   :  { %419 = vmatpush3.bf16.msra.mxu0 %v447_v16 }
  0x6d   :  { %420 = vmatprep.subr.bf16.mxu0 %v582_v0 }
  0x70   :  { %421 = vmatpush3.bf16.msra.mxu0 %v448_v17 }
  0x71   :  { %422 = vmatprep.subr.bf16.mxu0 %v582_v0 }
  0x74   :  { %423 = vmatpush3.bf16.msra.mxu0 %v449_v18 }
  0x75   :  { %424 = vmatprep.subr.bf16.mxu0 %v582_v0 }
  0x78   :  { %425 = vmatpush3.bf16.msra.mxu0 %v450_v19 }
 0x135   :  { %v156_v20 = vpop.f32.mrb[0].mxu1 }
 0x136   :  { %v400_v21 = vpop.f32.mrb[1].mxu1 }
 0x137   :  { %v159_v22 = vpop.f32.mrb[2].mxu1 }
 0x138   :  { %v401_v23 = vpop.f32.mrb[3].mxu1 }
 0x13d   :  { %v211_v24 = vpop.f32.mrb[4].mxu1 }
 0x13e   :  { %v212_v26 = vadd.f32 %v211_v24, %v156_v20  ;;  %v408_v27 = vpop.f32.mrb[5].mxu1 }
 0x13f   :  { %v214_v28 = vpop.f32.mrb[6].mxu1 }
 0x140   :  { %v224_v29 = vadd.f32 %v368_v25, %v212_v26  ;;  %v409_v30 = vpop.f32.mrb[7].mxu1 }
 0x142   :  { %v369_v31 = vmul.f32 -1.442695, %v224_v29 }
 0x144   :  { %451 = vpow2.f32 %v369_v31 }
 0x14e   :  { %v452_v32 = vpop.eup %451 }
 0x14f   :  { %v228_v33 = vadd.f32 1.0, %v452_v32 }
 0x151   :  { %453 = vrcp.f32 %v228_v33 }
 0x15b   :  { %v454_v34 = vpop.eup %453 }
 0x15c   :  { %v231_v35 = vpack.c.bf16 %v454_v34, %v454_v34 }
 0x15e   :  { %427 = vmatmul.mubr.bf16.vlgmr.msra.gmra.mrb[0].mxu0 %v231_v35 }
 0x231   :  { %v337_v37 = vpop.f32.mrb[0].mxu0 }
 0x232   :  { %v338_v38 = vadd.f32 %v370_v36, %v337_v37  ;;  %v428_v39 = vpop.f32.mrb[1].mxu0 }
 0x233   :  { %v340_v40 = vpop.f32.mrb[2].mxu0 }
 0x234   :  { %343 = vmax.xlane.f32.xlu0 %v338_v38  ;;  %v429_v41 = vpop.f32.mrb[3].mxu0 }
 0x2c1   :  { %v344_v42 = vpop.xlane.xlu0 %343 }
 0x2c2   :  { %v345_v43 = vsub.f32 %v338_v38, %v344_v42 }
 0x2c4   :  { %v346_v44 = vmul.f32 1.442695, %v345_v43 }
 0x2c6   :  { %455 = vpow2.f32 %v346_v44 }
 0x2d0   :  { %v456_v45 = vpop.eup %455 }
 0x2d1   :  { %348 = vadd.xlane.f32.xlu0 %v456_v45 }
 0x35e   :  { %v349_v46 = vpop.xlane.xlu0 %348 }
 0x35f   :  { %457 = vlog2.f32 %v349_v46 }
 0x369   :  { %v458_v47 = vpop.eup %457 }
 0x36a   :  { %v351_v48 = vmul.f32 0.6931472, %v458_v47 }
 0x36c   :  { %v352_v49 = vsub.f32 %v345_v43, %v351_v48 }
 0x36e   :  { %v353_v50 = vpack.c.bf16 %v352_v49, %v352_v49 }
 0x370   :  { %354 = vst [vmem:[%s712_s7] sm:$0xf] %v353_v50 }
 0x371   :  { %359 = vsyncpa [#allocation3], 1 }
 0x372   :  { %360 = vsyncpa [#allocation5], 1 }
 0x373   :  { %361 = vsyncpa [#allocation8], 1 }

</bundles_post_ra>
